<compile_context>
chip_gen: v7x
topology: tpu7x:2x2x1
jax: 0.10.0
libtpu: 0.0.40
codegen_flags: <defaults>
</compile_context>

<pallas_src>
import functools
import math

import jax
import jax.numpy as jnp
from jax.experimental import pallas as pl
from jax.experimental.pallas import tpu as pltpu


# ----------------------------------------------------------------------------
# Small helpers
# ----------------------------------------------------------------------------
def _layer_norm(v, gamma, beta, eps=1e-5):
    v = v.astype(jnp.float32)                      # statistics in f32
    mu = jnp.mean(v, axis=-1, keepdims=True)
    var = jnp.mean((v - mu) ** 2, axis=-1, keepdims=True)
    return (v - mu) * jax.lax.rsqrt(var + eps) * gamma + beta


def _gelu(v):
    c = math.sqrt(2.0 / math.pi)
    return 0.5 * v * (1.0 + jnp.tanh(c * (v + 0.044715 * v * v * v)))


@functools.lru_cache(maxsize=1)
def _vmem_capacity_bytes():
    try:
        cap = getattr(pltpu.get_tpu_info(), "vmem_capacity_bytes", None)
        if cap:
            return int(cap)
    except Exception:
        pass
    return 64 * 1024 * 1024                        # conservative default (v7x per-core VMEM)


def _pick_tq(n_tokens, vmem_cap):
    """Query-token tile: generation-aware, lane/sublane-legal, divides N."""
    if n_tokens <= 128:
        return n_tokens
    if vmem_cap >= 100 * 1024 * 1024 and n_tokens % 256 == 0:
        return 256                                 # v5e/v6e (128 MiB VMEM): fill 256-wide MXU M dim
    if n_tokens % 128 == 0:
        return 128                                 # v7x (64 MiB VMEM): budget-safe default
    for cand in (64, 32, 16, 8):
        if n_tokens % cand == 0:
            return cand
    return n_tokens                                # whole sequence as one full-dim tile


def _pick_tff(ff_hidden):
    """FFN hidden-dim chunk (lane-legal: multiple of 128 or the full dim)."""
    for cand in (512, 256, 128):
        if ff_hidden >= cand and ff_hidden % cand == 0:
            return cand
    return ff_hidden


# ----------------------------------------------------------------------------
# Kernel 1: LN1 + fused K/V projection, lane-dense (B, N, E) bf16 outputs.
# ----------------------------------------------------------------------------
def _kv_proj_kernel(x_ref, ln1_g_ref, ln1_b_ref, w_kv_ref, b_kv_ref,
                    k_out_ref, v_out_ref):
    e = k_out_ref.shape[-1]
    x = x_ref[0].astype(jnp.float32)                                   # (T, E)
    h = _layer_norm(x, ln1_g_ref[...], ln1_b_ref[...]).astype(jnp.bfloat16)
    # One lane-dense (T,E)@(E,2E) matmul for K & V, split afterwards.
    kv = jnp.dot(h, w_kv_ref[...], preferred_element_type=jnp.float32) + b_kv_ref[...]
    kv = kv.astype(jnp.bfloat16)
    k_out_ref[0] = kv[:, :e]
    v_out_ref[0] = kv[:, e:]


# ----------------------------------------------------------------------------
# Kernel 2 (grid = (batch, query-tile, ffn-chunk)):
#   Q proj + batched MHSA + out-proj + residual + LN2 + chunked FFN + residual.
# ----------------------------------------------------------------------------
def _encoder_kernel(x_ref, k_ref, v_ref,
                    ln1_g_ref, ln1_b_ref,
                    wq_ref, bq_ref,
                    wfc_ref, bfc_ref,
                    ln2_g_ref, ln2_b_ref,
                    wff1_ref, bff1_ref, wff2_ref, bff2_ref,
                    o_ref,
                    x1_scr, h2_scr, ffacc_scr, *, num_heads):
    fi = pl.program_id(2)

    @pl.when(fi == 0)
    def _attention_and_ln2():
        tq, e = x_ref.shape[1], x_ref.shape[2]
        n_kv = k_ref.shape[1]
        hd = e // num_heads

        x = x_ref[0].astype(jnp.float32)                               # (TQ, E)
        hq = _layer_norm(x, ln1_g_ref[...], ln1_b_ref[...]).astype(jnp.bfloat16)

        # Q projection: single lane-dense (TQ,E)@(E,E) matmul (1/sqrt(hd) folded into wq/bq).
        q = jnp.dot(hq, wq_ref[...], preferred_element_type=jnp.float32) + bq_ref[...]

        # Head split in VMEM; all heads at once via batched einsums, softmax in f32.
        qh = q.astype(jnp.bfloat16).reshape(tq, num_heads, hd)
        kh = k_ref[0].reshape(n_kv, num_heads, hd)
        vh = v_ref[0].reshape(n_kv, num_heads, hd)

        s = jnp.einsum('qhd,khd->hqk', qh, kh, preferred_element_type=jnp.float32)
        s = s - jnp.max(s, axis=-1, keepdims=True)
        p = jnp.exp(s)
        p = p * pl.reciprocal(jnp.sum(p, axis=-1, keepdims=True), approx=True)
        ctx = jnp.einsum('hqk,khd->qhd', p.astype(jnp.bfloat16), vh,
                         preferred_element_type=jnp.float32)           # (TQ, H, hd)

        # Output projection: one (TQ,E)@(E,E) matmul on the merged heads.
        ctx2 = ctx.reshape(tq, e).astype(jnp.bfloat16)
        attn = jnp.dot(ctx2, wfc_ref[...], preferred_element_type=jnp.float32) + bfc_ref[...]

        x1 = x + attn                                 # residual 1 (dropout = identity, eval mode)
        x1_scr[...] = x1
        h2_scr[...] = _layer_norm(x1, ln2_g_ref[...], ln2_b_ref[...]).astype(jnp.bfloat16)
        ffacc_scr[...] = jnp.zeros_like(ffacc_scr)

    # FFN hidden-dim chunk: acc += gelu(h2 @ wff1[:, chunk] + bff1[chunk]) @ wff2[chunk, :].
    ff = jnp.dot(h2_scr[...], wff1_ref[...], preferred_element_type=jnp.float32) + bff1_ref[...]
    ff = _gelu(ff).astype(jnp.bfloat16)
    ffacc_scr[...] += jnp.dot(ff, wff2_ref[...], preferred_element_type=jnp.float32)

    @pl.when(fi == pl.num_programs(2) - 1)
    def _finalize():
        o_ref[0] = (x1_scr[...] + ffacc_scr[...] + bff2_ref[...]).astype(o_ref.dtype)


# ----------------------------------------------------------------------------
# Wrapper
# ----------------------------------------------------------------------------
def _prepare_params(params, emb_size, num_heads):
    """Split QKV into Q and fused-KV columns, fold the attention scale into Q,
    cast matmul weights to bf16 (biases / LN params stay f32)."""
    hd = emb_size // num_heads
    scale = 1.0 / math.sqrt(hd)
    bf16 = jnp.bfloat16
    w_qkv, b_qkv = params["w_qkv"], params["b_qkv"]
    return dict(
        ln1_g=params["ln1_g"], ln1_b=params["ln1_b"],
        wq=(w_qkv[:, :emb_size] * scale).astype(bf16),
        bq=b_qkv[:, :emb_size] * scale,
        w_kv=w_qkv[:, emb_size:].astype(bf16),                         # (E, 2E): K cols then V cols
        b_kv=b_qkv[:, emb_size:],
        wfc=params["w_fc"].astype(bf16), bfc=params["b_fc"],
        ln2_g=params["ln2_g"], ln2_b=params["ln2_b"],
        wff1=params["w_ff1"].astype(bf16), bff1=params["b_ff1"],
        wff2=params["w_ff2"].astype(bf16), bff2=params["b_ff2"],
    )


def transformer_encoder_block(x, params, *, emb_size, num_heads):
    B, N, E = x.shape
    assert E == emb_size and emb_size % num_heads == 0
    p = _prepare_params(params, emb_size, num_heads)
    ff_hidden = p["wff1"].shape[1]
    H = num_heads

    vmem_cap = _vmem_capacity_bytes()
    vmem_limit = min((vmem_cap * 3) // 4, 112 * 1024 * 1024)

    tq = _pick_tq(N, vmem_cap)
    # Guarantee >= 2 steps on the parallel grid axes so both v7x TensorCores get work.
    if B * (N // tq) < 2:
        half = tq // 2
        if half >= 8 and half % 8 == 0 and N % half == 0:
            tq = half
    n_qt = N // tq

    tff = _pick_tff(ff_hidden)
    n_ff = ff_hidden // tff

    itemsize = jnp.dtype(x.dtype).itemsize

    # ---- kernel 1: LN1 + fused K/V projection ----
    kv_cost = pl.CostEstimate(
        flops=int(4 * B * N * E * E + 10 * B * N * E),
        transcendentals=int(B * N),
        bytes_accessed=int(B * N * E * itemsize + 4 * B * N * E
                           + 4 * E * E + 8 * E + 16 * E),
    )
    k_nd, v_nd = pl.pallas_call(
        _kv_proj_kernel,
        out_shape=(jax.ShapeDtypeStruct((B, N, E), jnp.bfloat16),
                   jax.ShapeDtypeStruct((B, N, E), jnp.bfloat16)),
        grid_spec=pltpu.PrefetchScalarGridSpec(
            num_scalar_prefetch=0,
            grid=(B, n_qt),
            in_specs=[pl.BlockSpec((1, tq, E), lambda b, t: (b, t, 0)),
                      pl.BlockSpec(p["ln1_g"].shape, lambda b, t: (0, 0)),
                      pl.BlockSpec(p["ln1_b"].shape, lambda b, t: (0, 0)),
                      pl.BlockSpec(p["w_kv"].shape, lambda b, t: (0, 0)),
                      pl.BlockSpec(p["b_kv"].shape, lambda b, t: (0, 0))],
            out_specs=(pl.BlockSpec((1, tq, E), lambda b, t: (b, t, 0)),
                       pl.BlockSpec((1, tq, E), lambda b, t: (b, t, 0))),
        ),
        compiler_params=pltpu.CompilerParams(
            dimension_semantics=("parallel", "parallel"),
            vmem_limit_bytes=vmem_limit),
        cost_estimate=kv_cost,
    )(x, p["ln1_g"], p["ln1_b"], p["w_kv"], p["b_kv"])

    # ---- kernel 2: attention + out-proj + residual + LN2 + chunked FFN + residual ----
    blk_cost = pl.CostEstimate(
        flops=int(B * (4 * N * E * E + 4 * N * N * E + 4 * N * E * ff_hidden + 40 * N * E)),
        transcendentals=int(B * (H * N * N + N * ff_hidden + 2 * N)),
        bytes_accessed=int(B * (2 * N * E * itemsize + 4 * N * E)
                           + (2 * E * E + 2 * E * ff_hidden) * 2
                           + (4 * E + 2 * ff_hidden) * 4),
    )

    def _c(arr):  # grid-invariant weight spec
        return pl.BlockSpec(arr.shape, lambda b, t, f: (0, 0))

    out = pl.pallas_call(
        functools.partial(_encoder_kernel, num_heads=num_heads),
        out_shape=jax.ShapeDtypeStruct((B, N, E), x.dtype),
        grid_spec=pltpu.PrefetchScalarGridSpec(
            num_scalar_prefetch=0,
            grid=(B, n_qt, n_ff),
            in_specs=[pl.BlockSpec((1, tq, E), lambda b, t, f: (b, t, 0)),   # x tile
                      pl.BlockSpec((1, N, E), lambda b, t, f: (b, 0, 0)),    # K (per-batch resident)
                      pl.BlockSpec((1, N, E), lambda b, t, f: (b, 0, 0)),    # V
                      _c(p["ln1_g"]), _c(p["ln1_b"]),
                      _c(p["wq"]), _c(p["bq"]),
                      _c(p["wfc"]), _c(p["bfc"]),
                      _c(p["ln2_g"]), _c(p["ln2_b"]),
                      pl.BlockSpec((E, tff), lambda b, t, f: (0, f)),        # wff1 chunk
                      pl.BlockSpec((1, tff), lambda b, t, f: (0, f)),        # bff1 chunk
                      pl.BlockSpec((tff, E), lambda b, t, f: (f, 0)),        # wff2 chunk
                      _c(p["bff2"])],
            out_specs=pl.BlockSpec((1, tq, E), lambda b, t, f: (b, t, 0)),
            scratch_shapes=[pltpu.VMEM((tq, E), jnp.float32),    # x1 (residual 1)
                            pltpu.VMEM((tq, E), jnp.bfloat16),   # LN2(x1)
                            pltpu.VMEM((tq, E), jnp.float32)],   # FFN f32 accumulator
        ),
        compiler_params=pltpu.CompilerParams(
            dimension_semantics=("parallel", "parallel", "arbitrary"),
            vmem_limit_bytes=vmem_limit),
        cost_estimate=blk_cost,
    )(x, k_nd, v_nd,
      p["ln1_g"], p["ln1_b"], p["wq"], p["bq"], p["wfc"], p["bfc"],
      p["ln2_g"], p["ln2_b"], p["wff1"], p["bff1"], p["wff2"], p["bff2"])
    return out


# ----------------------------------------------------------------------------
# Parameters + pure-JAX reference (f32, exact-erf GELU) for a sanity check.
# ----------------------------------------------------------------------------
def init_params(key, emb_size, num_heads, ff_hidden_mult=4):
    ff_hidden = ff_hidden_mult * emb_size
    ks = jax.random.split(key, 6)
    s = 0.02
    return {
        "ln1_g": jnp.ones((1, emb_size), jnp.float32),
        "ln1_b": jnp.zeros((1, emb_size), jnp.float32),
        "w_qkv": s * jax.random.normal(ks[0], (emb_size, 3 * emb_size), jnp.float32),
        "b_qkv": s * jax.random.normal(ks[1], (1, 3 * emb_size), jnp.float32),
        "w_fc": s * jax.random.normal(ks[2], (emb_size, emb_size), jnp.float32),
        "b_fc": jnp.zeros((1, emb_size), jnp.float32),
        "ln2_g": jnp.ones((1, emb_size), jnp.float32),
        "ln2_b": jnp.zeros((1, emb_size), jnp.float32),
        "w_ff1": s * jax.random.normal(ks[3], (emb_size, ff_hidden), jnp.float32),
        "b_ff1": s * jax.random.normal(ks[4], (1, ff_hidden), jnp.float32),
        "w_ff2": s * jax.random.normal(ks[5], (ff_hidden, emb_size), jnp.float32),
        "b_ff2": jnp.zeros((1, emb_size), jnp.float32),
    }


def _reference(x, params, *, emb_size, num_heads):
    hd = emb_size // num_heads

    def ln(v, g, b, eps=1e-5):
        mu = jnp.mean(v, axis=-1, keepdims=True)
        var = jnp.mean((v - mu) ** 2, axis=-1, keepdims=True)
        return (v - mu) * jax.lax.rsqrt(var + eps) * g + b

    B, N, E = x.shape
    h = ln(x, params["ln1_g"], params["ln1_b"])
    qkv = h @ params["w_qkv"] + params["b_qkv"]
    qkv = qkv.reshape(B, N, 3, num_heads, hd).transpose(2, 0, 3, 1, 4)
    q, k, v = qkv[0], qkv[1], qkv[2]
    s = jnp.einsum('bhnd,bhmd->bhnm', q, k) / math.sqrt(hd)
    pmat = jax.nn.softmax(s, axis=-1)
    ctx = jnp.einsum('bhnm,bhmd->bhnd', pmat, v)
    ctx = ctx.transpose(0, 2, 1, 3).reshape(B, N, E)
    attn = ctx @ params["w_fc"] + params["b_fc"]
    x1 = x + attn
    h2 = ln(x1, params["ln2_g"], params["ln2_b"])
    ff = jax.nn.gelu(h2 @ params["w_ff1"] + params["b_ff1"], approximate=False)
    ff = ff @ params["w_ff2"] + params["b_ff2"]
    return x1 + ff


if __name__ == "__main__":
    B, N, E, H = 2, 8, 32, 4   # batch, tokens, emb_size, num_heads
    key = jax.random.PRNGKey(0)
    kx, kp = jax.random.split(key)

    x = jax.random.normal(kx, (B, N, E), jnp.float32)
    params = init_params(kp, E, H)

    out = transformer_encoder_block(x, params, emb_size=E, num_heads=H)
    out = jax.block_until_ready(out)

    assert out.shape == (B, N, E) and out.dtype == jnp.float32
    assert bool(jnp.all(jnp.isfinite(out)))
    ref = _reference(x, params, emb_size=E, num_heads=H)
    err = float(jnp.max(jnp.abs(out - ref)))
    assert err < 5e-2, f"mismatch vs f32 reference: {err}"
    print("KERNEL_OK")
</pallas_src>

<mosaic_0001>
module attributes {stable_mosaic.version = 11 : i64} {
  func.func @_kv_proj_kernel(%arg0: i32, %arg1: i32, %arg2: memref<1x8x32xf32, #tpu.memory_space<vmem>>, %arg3: memref<1x32xf32, #tpu.memory_space<vmem>>, %arg4: memref<1x32xf32, #tpu.memory_space<vmem>>, %arg5: memref<32x64xbf16, #tpu.memory_space<vmem>>, %arg6: memref<1x64xf32, #tpu.memory_space<vmem>>, %arg7: memref<1x8x32xbf16, #tpu.memory_space<vmem>>, %arg8: memref<1x8x32xbf16, #tpu.memory_space<vmem>>) attributes {dimension_semantics = [#tpu.dimension_semantics<parallel>, #tpu.dimension_semantics<parallel>], iteration_bounds = array<i64: 2, 1>, scalar_prefetch = 0 : i64, scratch_operands = 0 : i64, tpu.core_type = #tpu.core_type<tc>, window_params = [{transform_indices = @transform_0, window_bounds = array<i64: 1, 8, 32>}, {pipeline_mode = #tpu.pipeline_mode<synchronous>, transform_indices = @transform_1, window_bounds = array<i64: 1, 32>}, {pipeline_mode = #tpu.pipeline_mode<synchronous>, transform_indices = @transform_2, window_bounds = array<i64: 1, 32>}, {pipeline_mode = #tpu.pipeline_mode<synchronous>, transform_indices = @transform_3, window_bounds = array<i64: 32, 64>}, {pipeline_mode = #tpu.pipeline_mode<synchronous>, transform_indices = @transform_4, window_bounds = array<i64: 1, 64>}, {transform_indices = @transform_5, window_bounds = array<i64: 1, 8, 32>}, {transform_indices = @transform_6, window_bounds = array<i64: 1, 8, 32>}]} {
    %c0 = arith.constant 0 : index
    %c0_0 = arith.constant 0 : index
    %c0_1 = arith.constant 0 : index
    %0 = vector.load %arg2[%c0, %c0_0, %c0_1] : memref<1x8x32xf32, #tpu.memory_space<vmem>>, vector<1x8x32xf32>
    %1 = vector.shape_cast %0 : vector<1x8x32xf32> to vector<8x32xf32>
    %c0_2 = arith.constant 0 : index
    %c0_3 = arith.constant 0 : index
    %2 = vector.load %arg3[%c0_2, %c0_3] : memref<1x32xf32, #tpu.memory_space<vmem>>, vector<1x32xf32>
    %c0_4 = arith.constant 0 : index
    %c0_5 = arith.constant 0 : index
    %3 = vector.load %arg4[%c0_4, %c0_5] : memref<1x32xf32, #tpu.memory_space<vmem>>, vector<1x32xf32>
    %cst = arith.constant dense<0.000000e+00> : vector<8xf32>
    %4 = vector.multi_reduction <add>, %1, %cst [1] : vector<8x32xf32> to vector<8xf32>
    %5 = vector.shape_cast %4 : vector<8xf32> to vector<8x1xf32>
    %cst_6 = arith.constant 3.200000e+01 : f32
    %6 = vector.broadcast %cst_6 : f32 to vector<8x1xf32>
    %7 = arith.divf %5, %6 : vector<8x1xf32>
    %8 = vector.broadcast %7 : vector<8x1xf32> to vector<8x32xf32>
    %9 = arith.subf %1, %8 : vector<8x32xf32>
    %10 = arith.mulf %9, %9 : vector<8x32xf32>
    %cst_7 = arith.constant dense<0.000000e+00> : vector<8xf32>
    %11 = vector.multi_reduction <add>, %10, %cst_7 [1] : vector<8x32xf32> to vector<8xf32>
    %12 = vector.shape_cast %11 : vector<8xf32> to vector<8x1xf32>
    %cst_8 = arith.constant 3.200000e+01 : f32
    %13 = vector.broadcast %cst_8 : f32 to vector<8x1xf32>
    %14 = arith.divf %12, %13 : vector<8x1xf32>
    %15 = vector.broadcast %7 : vector<8x1xf32> to vector<8x32xf32>
    %16 = arith.subf %1, %15 : vector<8x32xf32>
    %cst_9 = arith.constant 9.99999974E-6 : f32
    %17 = vector.broadcast %cst_9 : f32 to vector<8x1xf32>
    %18 = arith.addf %14, %17 : vector<8x1xf32>
    %19 = math.rsqrt %18 : vector<8x1xf32>
    %20 = vector.broadcast %19 : vector<8x1xf32> to vector<8x32xf32>
    %21 = arith.mulf %16, %20 : vector<8x32xf32>
    %22 = vector.broadcast %2 : vector<1x32xf32> to vector<8x32xf32>
    %23 = arith.mulf %21, %22 : vector<8x32xf32>
    %24 = vector.broadcast %3 : vector<1x32xf32> to vector<8x32xf32>
    %25 = arith.addf %23, %24 : vector<8x32xf32>
    %26 = arith.truncf %25 : vector<8x32xf32> to vector<8x32xbf16>
    %c0_10 = arith.constant 0 : index
    %c0_11 = arith.constant 0 : index
    %27 = vector.load %arg5[%c0_10, %c0_11] : memref<32x64xbf16, #tpu.memory_space<vmem>>, vector<32x64xbf16>
    %cst_12 = arith.constant dense<0.000000e+00> : vector<8x64xf32>
    %28 = tpu.matmul %26, %27, %cst_12 {dimension_numbers = #tpu.dot_dimension_numbers<[1], [0], [0], [1], [0, 0, 1, 1], [], []>} : vector<8x32xbf16>, vector<32x64xbf16>, vector<8x64xf32> -> vector<8x64xf32>
    %c0_13 = arith.constant 0 : index
    %c0_14 = arith.constant 0 : index
    %29 = vector.load %arg6[%c0_13, %c0_14] : memref<1x64xf32, #tpu.memory_space<vmem>>, vector<1x64xf32>
    %30 = vector.broadcast %29 : vector<1x64xf32> to vector<8x64xf32>
    %31 = arith.addf %28, %30 : vector<8x64xf32>
    %32 = arith.truncf %31 : vector<8x64xf32> to vector<8x64xbf16>
    %33 = vector.extract_strided_slice %32 {offsets = [0, 0], sizes = [8, 32], strides = [1, 1]} : vector<8x64xbf16> to vector<8x32xbf16>
    %c0_15 = arith.constant 0 : index
    %c0_16 = arith.constant 0 : index
    %c0_17 = arith.constant 0 : index
    %34 = vector.load %arg7[%c0_15, %c0_16, %c0_17] : memref<1x8x32xbf16, #tpu.memory_space<vmem>>, vector<1x8x32xbf16>
    %35 = vector.shape_cast %34 : vector<1x8x32xbf16> to vector<8x32xbf16>
    %36 = vector.shape_cast %33 : vector<8x32xbf16> to vector<1x8x32xbf16>
    tpu.vector_store %arg7[%c0_15, %c0_16, %c0_17], %36 {strides = array<i32>} : memref<1x8x32xbf16, #tpu.memory_space<vmem>>, vector<1x8x32xbf16>,
    %37 = vector.extract_strided_slice %32 {offsets = [0, 32], sizes = [8, 32], strides = [1, 1]} : vector<8x64xbf16> to vector<8x32xbf16>
    %c0_18 = arith.constant 0 : index
    %c0_19 = arith.constant 0 : index
    %c0_20 = arith.constant 0 : index
    %38 = vector.load %arg8[%c0_18, %c0_19, %c0_20] : memref<1x8x32xbf16, #tpu.memory_space<vmem>>, vector<1x8x32xbf16>
    %39 = vector.shape_cast %38 : vector<1x8x32xbf16> to vector<8x32xbf16>
    %40 = vector.shape_cast %37 : vector<8x32xbf16> to vector<1x8x32xbf16>
    tpu.vector_store %arg8[%c0_18, %c0_19, %c0_20], %40 {strides = array<i32>} : memref<1x8x32xbf16, #tpu.memory_space<vmem>>, vector<1x8x32xbf16>,
    return
  }
  func.func @transform_0(%arg0: i32, %arg1: i32) -> (i32, i32, i32) {
    %c0_i32 = arith.constant 0 : i32
    %c0_i32_0 = arith.constant 0 : i32
    return %arg0, %arg1, %c0_i32 : i32, i32, i32
  }
  func.func @transform_1(%arg0: i32, %arg1: i32) -> (i32, i32) {
    %c0_i32 = arith.constant 0 : i32
    %c0_i32_0 = arith.constant 0 : i32
    %c0_i32_1 = arith.constant 0 : i32
    return %c0_i32, %c0_i32_0 : i32, i32
  }
  func.func @transform_2(%arg0: i32, %arg1: i32) -> (i32, i32) {
    %c0_i32 = arith.constant 0 : i32
    %c0_i32_0 = arith.constant 0 : i32
    %c0_i32_1 = arith.constant 0 : i32
    return %c0_i32, %c0_i32_0 : i32, i32
  }
  func.func @transform_3(%arg0: i32, %arg1: i32) -> (i32, i32) {
    %c0_i32 = arith.constant 0 : i32
    %c0_i32_0 = arith.constant 0 : i32
    %c0_i32_1 = arith.constant 0 : i32
    return %c0_i32, %c0_i32_0 : i32, i32
  }
  func.func @transform_4(%arg0: i32, %arg1: i32) -> (i32, i32) {
    %c0_i32 = arith.constant 0 : i32
    %c0_i32_0 = arith.constant 0 : i32
    %c0_i32_1 = arith.constant 0 : i32
    return %c0_i32, %c0_i32_0 : i32, i32
  }
  func.func @transform_5(%arg0: i32, %arg1: i32) -> (i32, i32, i32) {
    %c0_i32 = arith.constant 0 : i32
    %c0_i32_0 = arith.constant 0 : i32
    return %arg0, %arg1, %c0_i32 : i32, i32, i32
  }
  func.func @transform_6(%arg0: i32, %arg1: i32) -> (i32, i32, i32) {
    %c0_i32 = arith.constant 0 : i32
    %c0_i32_0 = arith.constant 0 : i32
    return %arg0, %arg1, %c0_i32 : i32, i32, i32
  }
}

</mosaic_0001>

<bundles_post_ra>
// kernel: tpu_custom_call.1
= control target key start
LH: loop header
LB: loop body
LE: loop exit
PB: predicated region body
PF: predicated region fallthrough
CT: control target
= control target key end

     0   :  { %s1191_s0 = inlined_call_operand.hbm [shape: f32[2,8,32], index: 0, kind: input, shape index: {}]   ;;  %s1192_s1 = inlined_call_operand.vmem [shape: f32[1,32], index: 1, kind: input, shape index: {}]   ;;  %s1193_s2 = inlined_call_operand.vmem [shape: f32[1,32], index: 2, kind: input, shape index: {}]   ;;  %s1194_s3 = inlined_call_operand.hbm [shape: bf16[32,64], index: 3, kind: input, shape index: {}]   ;;  %s1195_s4 = inlined_call_operand.vmem [shape: f32[1,64], index: 4, kind: input, shape index: {}]   ;;  %s1196_s5 = inlined_call_operand.hbm [shape: bf16[2,8,32], index: 5, kind: output, shape index: {0}]   ;;  %s1197_s6 = inlined_call_operand.hbm [shape: bf16[2,8,32], index: 6, kind: output, shape index: {1}]  }
   0x1   :  { %1202 = sst [smem:[#allocation14_spill]] %s1194_s3 }
   0x2   :  { %12 = vsyncpa [#allocation3], 0 }
   0x3   :  { %14 = vsyncpa [#allocation3 + $0x1], 0 }
   0x4   :  { %15 = vsyncpa [#allocation6], 0 }
   0x5   :  { %16 = vsyncpa [#allocation4], 0 }
   0x6   :  { %18 = vsyncpa [#allocation4 + $0x1], 0 }
   0x7   :  { %19 = vsyncpa [#allocation9], 0 }
   0x8   :  { %21 = vsyncpa [#allocation9 + $0x1], 0  ;;  %s925_s21 = smov 0   ;;  %s927_s22 = smov 0  }
   0x9   :  { %s929_s23 = smov 0   ;;  %s931_s24 = smov 0  }
   0xa   :  { %s933_s25 = smov 0   ;;  %s935_s26 = smov 0  }
   0xb LB: > { %s579_s27 = sadd.s32 4294967295, %s879_s26   ;;  %s580_s28 = sadd.s32 4294967294, %s879_s26   ;;  %s879_s26 = sphi %s935_s26, %s27_s26   ;;  %s875_s25 = sphi %s933_s25, %s1223_s25   ;;  %s871_s24 = sphi %s931_s24, %s1222_s24   ;;  %s867_s23 = sphi %s929_s23, %s1221_s23   ;;  %s863_s22 = sphi %s927_s22, %s1220_s22   ;;  %s859_s21 = sphi %s925_s21, %s1219_s21  }
   0xc   : > { %p61_p0 = scmp.ne.s32.totalorder %s863_s22, %s859_s21  ;;  %p959_p1 = scmp.eq.s32.totalorder %s579_s27, 0 }
   0xd   : > { %p963_p2 = scmp.eq.s32.totalorder %s579_s27, 1  ;;  %p177_p3 = scmp.eq.s32.totalorder %s580_s28, 1 }
   0xe   : > { %s1203_s29 = scalar_select %p959_p1, 1, 0 }
   0xf   : > { %s1204_s30 = scalar_select %p963_p2, 1, 0 }
  0x10   : > { %p969_p4 = por %p959_p1, %p61_p0  ;;  %p581_p5 = scmp.ge.s32.totalorder %s879_s26, 1 }
  0x11   : > { %p974_p6 = por %p177_p3, %p61_p0  ;;  %p212_p7 = scmp.lt.s32.totalorder %s879_s26, 3 }
  0x12   : > { %s1205_s7 = scalar_select %p969_p4, 1, 0 }
  0x13   : > { %s1206_s8 = scalar_select %p974_p6, 1, 0 }
  0x14   : > { %p979_p8 = pnand %p581_p5, %p212_p7  ;;  %s881_s10 = smov [#allocation5]  }
  0x15   : > { %s230_s11 = sshll.u32 %s881_s10, 4  ;;  %s39_s13 = sadd.s32 1, %s875_s25  ;;  %s231_s11 = int_to_ptr.vmem [resolvable:$true] %s230_s11 }
  0x16   : > { %s1207_s9 = scalar_select %p979_p8, 1, 0 }
  0x17   : > { %p626_p9 = pneg %p979_p8  ;;  %s1209_s3 = sld [smem:[#allocation14_spill]] }
  0x19   : > { %p988_p11 = pnand %p626_p9, %p959_p1 }
  0x1b   : > { %p705_p13 = pneg %p988_p11 }
  0x1d   : > { %s703_s16 = scalar_lea.hbm %s1209_s3, 256 }
  0x1e   : > { %p704_p12 = scmp.ne.s32.totalorder %s1209_s3, %s703_s16  ;;  %p710_p5 = scmp.lt.u32.totalorder %s703_s16, %s1209_s3 }
  0x20   : > { %p706_p0 = pnand %p705_p13, %p704_p12 }
  0x22   : > { %p707_p3 = pneg %p706_p0 }
  0x24   : > { %p712_p7 = pnand %p710_p5, %p707_p3 }
  0x26   : > { %715 = shalt.err (!%p712_p7)
}
  0x27   : > { %s716_s27 = scalar_lea.vmem %s231_s11, 256  ;;  %p724_p1 = scmp.lt.s32.totalorder %s231_s11, %s231_s11 }
  0x28   : > { %p717_p9 = scmp.ne.s32.totalorder %s231_s11, %s716_s27  ;;  %p725_p4 = scmp.lt.s32.totalorder %s716_s27, %s716_s27 }
  0x2a   : > { %p719_p10 = pnand %p717_p9, %p705_p13  ;;  %p726_p8 = por %p725_p4, %p724_p1 }
  0x2c   : > { %p720_p6 = pneg %p719_p10 }
  0x2e   : > { %p727_p2 = pnand %p726_p8, %p720_p6 }
  0x30   : > { %730 = shalt.err (!%p727_p2)
}
  0x31   : > { %s882_s28 = smov 64   ;;  %s883_s10 = smov 4  }
  0x32   : > { %629 = dma.hbm_to_vmem [thread:$0]  (!%p988_p11), %s1209_s3, 256, %s231_s11, [#allocation6], %s882_s28, %s882_s28, %s883_s10  }
  0x33   : > { %p41_p1 = scmp.ge.s32.totalorder %s39_s13, 2  ;;  %s48_s16 = sadd.s32 1, %s867_s23 }
  0x34   : > { %p55_p2 = scmp.ne.s32.totalorder %s867_s23, %s863_s22  ;;  %p56_p4 = scmp.eq.s32.totalorder %s879_s26, 0 }
  0x35   : > { %s1225_s13 = smov (%p41_p1, %s39_s13), 0  ;;  %p1211_p8 = scmp.ne.s32.totalorder %s1204_s30, 0 }
  0x36   : > { %p1015_p6 = por %p56_p4, %p55_p2  ;;  %s43_s12 = ssub.s32 %s875_s25, %s1225_s13 }
  0x37   : > { %p1021_p10 = por %p1211_p8, %p55_p2  ;;  %p642_p12 = scmp.lt.s32.totalorder %s879_s26, 2 }
  0x38   : > { %p46_p11 = scmp.eq.s32.totalorder %s43_s12, 0  ;;  %s247_s11 = sand.u32 1, %s867_s23  }
  0x39   : > { %s584_s19 = sshll.u32 %s247_s11, 3  ;;  %s585_s27 = sshll.u32 %s875_s25, 7 }
  0x3a   : > { %s1030_s20 = scalar_select %p46_p11, %s867_s23, %s48_s16  }
  0x3b   : > { %s1036_s14 = scalar_lea.hbm %s1191_s0, %s585_s27  ;;  %s251_s30 = scalar_lea.vmem [#allocation2], %s584_s19 }
  0x3c   : > { %s259_s15 = sshll.u32 %s251_s30, 4  ;;  %p1042_p13 = pnand %p642_p12, %p1015_p6  ;;  %s1038_s15 = int_to_ptr.vmem [resolvable:$true] %s259_s15 }
  0x3d   : > { %s248_s16 = scalar_lea.sflag [#allocation3], %s247_s11  ;;  %s731_s3 = scalar_lea.hbm %s1036_s14, 128 }
  0x3e   : > { %p732_p0 = scmp.ne.s32.totalorder %s1036_s14, %s731_s3  ;;  %p733_p3 = pneg %p1042_p13 }
  0x3f   : > { %s736_s28 = scalar_lea.hbm %s1191_s0, 256  ;;  %p737_p9 = scmp.lt.u32.totalorder %s1036_s14, %s1191_s0 }
  0x40   : > { %p734_p5 = pnand %p733_p3, %p732_p0  ;;  %p738_p1 = scmp.lt.u32.totalorder %s736_s28, %s731_s3 }
  0x41   : > { %p740_p4 = scmp.lt.u32.totalorder %s731_s3, %s1036_s14 }
  0x42   : > { %p735_p7 = pneg %p734_p5  ;;  %p739_p2 = por %p738_p1, %p737_p9 }
  0x44   : > { %p741_p6 = por %p740_p4, %p739_p2 }
  0x46   : > { %p742_p8 = pnand %p741_p6, %p735_p7 }
  0x48   : > { %745 = shalt.err (!%p742_p8)
}
  0x49   : > { %s746_s11 = scalar_lea.vmem %s1038_s15, 128  ;;  %s884_s30 = smov [#allocation2]  }
  0x4a   : > { %p747_p12 = scmp.ne.s32.totalorder %s1038_s15, %s746_s11  ;;  %s751_s19 = sshll.u32 %s884_s30, 4  ;;  %s752_s19 = int_to_ptr.vmem [resolvable:$false] %s751_s19 }
  0x4b   : > { %s753_s27 = scalar_lea.vmem %s752_s19, 256  ;;  %p754_p5 = scmp.lt.s32.totalorder %s1038_s15, %s752_s19 }
  0x4c   : > { %p749_p11 = pnand %p747_p12, %p733_p3  ;;  %p755_p9 = scmp.lt.s32.totalorder %s753_s27, %s746_s11 }
  0x4e   : > { %p750_p0 = pneg %p749_p11  ;;  %p756_p1 = por %p755_p9, %p754_p5 }
  0x50   : > { %p757_p2 = pnand %p756_p1, %p750_p0 }
  0x52   : > { %760 = shalt.err (!%p757_p2)
}
  0x53   : > { %633 = dma.hbm_to_vmem [thread:$0]  (!%p1042_p13), %s1036_s14, 128, %s1038_s15, %s248_s16  }
  0x54   : > { %p1214_p7 = scmp.ne.s32.totalorder %s1207_s9, 0 }
  0x55   : > { %s1074_s3 = sand.u32 (!%p1214_p7), 1, %s863_s22   ;;  %p1215_p3 = scmp.ne.s32.totalorder (!%p1214_p7), %s1205_s7, 0 }
  0x56   : > { %268 = sbr.rel (%p1214_p7) target bundleno = 758 (0x2f6), region = 40  ;;  %s587_s28 = sshll.u32 (!%p1214_p7), %s1074_s3, 3 }
  0x57   : > { %s271_s17 = scalar_lea.sflag (!%p1214_p7), [#allocation3], %s1074_s3  ;;  %s274_s10 = scalar_lea.vmem (!%p1214_p7), [#allocation2], %s587_s28 }
  0x5d   : > { %842 = dma.done.wait (%p1215_p3), %s271_s17, 128  }
  0x5e   : > { %844 = vsyncadd (%p1215_p3), %s271_s17, 4294967168  ;;  %p1216_p4 = scmp.ne.s32.totalorder %s1203_s29, 0 }
  0x60   : > { %846 = dma.done.wait (%p1216_p4), [#allocation6], 256  }
  0x61   : > { %848 = vsyncadd (%p1216_p4), [#allocation6], 4294967040  ;;  %vm316_vm0 = vcmask 261120   ;;  %v313_v0 = vld [vmem:[%s274_s10] sm:$0xff]  ;;  %v699_v7 = vld [vmem:[#allocation5] sm:$0xff]   ;;  %v885_v8 = vmov 0.0  }
  0x62   : > { %v317_v1 = vsel %vm316_vm0, %v313_v0, 0.0  ;;  %608 = vmatprep.subr.bf16.mxu0 %v885_v8  ;;  %v700_v9 = vld [vmem:[#allocation5 + $0x8] sm:$0xff]   ;;  %vm886_vm1 = vmmov 0   ;;  %v591_v14 = vld [vmem:[%s1192_s1] ss:$0 sm:$0xff]  ;;  %s589_s15 = sshll.u32 %s1074_s3, 2 }
  0x63   : > { %318 = vadd.xlane.f32.xlu0 %v317_v1  ;;  %609 = vmatpush3.bf16.msra.mxu0 %v699_v7  ;;  %v592_v16 = vld [vmem:[%s1193_s2] ss:$0 sm:$0xff]  ;;  %s600_s11 = sshll.u32 %s871_s24, 6  ;;  %s304_s30 = scalar_lea.vmem [#allocation7], %s589_s15  ;;  %vm413_vm2 = vcmask 257024  }
  0x64   : > { %612 = vmatprep.mubr.msk.bf16.mxu0 %vm886_vm1, %v885_v8  ;;  %610 = vmatprep.subr.bf16.mxu0 %v885_v8  ;;  %v593_v20 = vld [vmem:[%s1195_s4] ss:$0 sm:$0xff]  ;;  %s442_s19 = sshll.u32 %s304_s30, 4  ;;  %s1107_s17 = scalar_lea.hbm %s1196_s5, %s600_s11  ;;  %s1109_s19 = int_to_ptr.vmem [resolvable:$true] %s442_s19 }
  0x65   : > { %s887_s10 = smov 96   ;;  %s423_s29 = scalar_lea.sflag [#allocation4], %s1074_s3 }
  0x66   : > { %s761_s7 = scalar_lea.vmem %s1109_s19, 64  ;;  %s888_s9 = smov [#allocation7]  }
  0x67   : > { %611 = vmatpush3.bf16.msra.mxu0 %v700_v9  ;;  %p762_p13 = scmp.ne.s32.totalorder %s1109_s19, %s761_s7  ;;  %s765_s14 = sshll.u32 %s888_s9, 4  ;;  %s766_s14 = int_to_ptr.vmem [resolvable:$false] %s765_s14 }
  0x68   : > { %s767_s12 = scalar_lea.vmem %s766_s14, 128  ;;  %p768_p12 = scmp.lt.s32.totalorder %s1109_s19, %s766_s14 }
  0x69   : > { %p763_p6 = pnand %p762_p13, %p1021_p10  ;;  %p769_p11 = scmp.lt.s32.totalorder %s767_s12, %s761_s7 }
  0x6b   : > { %p764_p8 = pneg %p763_p6  ;;  %p770_p0 = por %p769_p11, %p768_p12 }
  0x6d   : > { %p771_p5 = pnand %p770_p0, %p764_p8 }
  0xf0   : > { %v319_v2 = vpop.xlane.xlu0 %318 }
  0xf1   : > { %v321_v3 = vmul.f32 0.03125, %v319_v2 }
  0xf3   : > { %v322_v4 = vsub.f32 %v313_v0, %v321_v3 }
  0xf5   : > { %v323_v5 = vmul.f32 %v322_v4, %v322_v4 }
  0xf7   : > { %v324_v6 = vsel %vm316_vm0, %v323_v5, 0.0 }
  0xf8   : > { %325 = vadd.xlane.f32.xlu0 %v324_v6 }
 0x185   : > { %v326_v10 = vpop.xlane.xlu0 %325 }
 0x186   : > { %v327_v11 = vmul.f32 0.03125, %v326_v10 }
 0x188   : > { %v328_v12 = vadd.f32 1e-05, %v327_v11 }
 0x18a   : > { %701 = vrsqrt.f32 %v328_v12 }
 0x194   : > { %v702_v13 = vpop.eup %701 }
 0x195   : > { %v330_v15 = vmul.f32 %v702_v13, %v322_v4 }
 0x197   : > { %v337_v17 = vmul.f32 %v591_v14, %v330_v15 }
 0x199   : > { %v344_v18 = vadd.f32 %v592_v16, %v337_v17 }
 0x19b   : > { %v345_v19 = vpack.c.bf16 %v344_v18, %v344_v18 }
 0x19d   : > { %613 = vmatmul.mubr.msk.bf16.vlgmr.msra.gmra.mrb[0].mxu0 %vm316_vm0, %v345_v19 }
 0x270   : > { %v406_v21 = vpop.f32.mrb[0].mxu0 }
 0x271   : > { %v407_v22 = vadd.f32 %v593_v20, %v406_v21  ;;  %v614_v23 = vpop.f32.mrb[1].mxu0 }
 0x272   : > { %v409_v24 = vpop.f32.mrb[2].mxu0 }
 0x273   : > { %v412_v25 = vpack.c.bf16 %v407_v22, %v407_v22  ;;  %v615_v26 = vpop.f32.mrb[3].mxu0 }
 0x275   : > { %418 = vrot.lane.b32.xlu1 %v412_v25, %s887_s10  ;;  %414 = vst.msk [vmem:[%s304_s30] sm:$0xf] %vm413_vm2, %v412_v25 }
 0x276   : > { %774 = shalt.err (!%p771_p5)
}
 0x277   : > { %s775_s16 = scalar_lea.hbm %s1107_s17, 64  ;;  %s779_s28 = scalar_lea.hbm %s1196_s5, 128 }
 0x278   : > { %p776_p9 = scmp.ne.s32.totalorder %s1107_s17, %s775_s16  ;;  %p780_p7 = scmp.lt.u32.totalorder %s1107_s17, %s1196_s5 }
 0x279   : > { %p781_p3 = scmp.lt.u32.totalorder %s779_s28, %s775_s16  ;;  %p783_p13 = scmp.lt.u32.totalorder %s775_s16, %s1107_s17 }
 0x27a   : > { %p777_p1 = pnand %p776_p9, %p1021_p10 }
 0x27b   : > { %p782_p4 = por %p781_p3, %p780_p7 }
 0x27c   : > { %p778_p2 = pneg %p777_p1 }
 0x27d   : > { %p784_p6 = por %p783_p13, %p782_p4 }
 0x27f   : > { %p785_p8 = pnand %p784_p6, %p778_p2 }
 0x281   : > { %788 = shalt.err (!%p785_p8)
}
 0x282   : > { %622 = dma.vmem_to_hbm [thread:$0]  (%p1021_p10), %s1109_s19, 64, %s1107_s17, %s423_s29  }
 0x283   : > { %s311_s7 = scalar_lea.vmem [#allocation8], %s589_s15  ;;  %s1141_s16 = scalar_lea.hbm %s1197_s6, %s600_s11 }
 0x284   : > { %s456_s14 = sshll.u32 %s311_s7, 4  ;;  %s428_s27 = scalar_lea.sflag [#allocation9], %s1074_s3  ;;  %s1143_s14 = int_to_ptr.vmem [resolvable:$true] %s456_s14 }
 0x285   : > { %s789_s28 = scalar_lea.vmem %s1143_s14, 64  ;;  %s889_s24 = smov [#allocation8]  }
 0x286   : > { %p790_p12 = scmp.ne.s32.totalorder %s1143_s14, %s789_s28  ;;  %s793_s15 = sshll.u32 %s889_s24, 4  ;;  %s794_s15 = int_to_ptr.vmem [resolvable:$false] %s793_s15 }
 0x287   : > { %s795_s19 = scalar_lea.vmem %s794_s15, 128  ;;  %p796_p5 = scmp.lt.s32.totalorder %s1143_s14, %s794_s15 }
 0x288   : > { %p791_p11 = pnand %p790_p12, %p1021_p10  ;;  %p797_p9 = scmp.lt.s32.totalorder %s795_s19, %s789_s28 }
 0x28a   : > { %p792_p0 = pneg %p791_p11  ;;  %p798_p1 = por %p797_p9, %p796_p5 }
 0x28c   : > { %p799_p2 = pnand %p798_p1, %p792_p0 }
 0x2e7   : > { %v419_v27 = vpop.permute.xlu1 %418 }
 0x2e8   : > { %421 = vst.msk [vmem:[%s311_s7] sm:$0xf] %vm413_vm2, %v419_v27 }
 0x2e9   : > { %802 = shalt.err (!%p799_p2)
}
 0x2ea   : > { %s803_s3 = scalar_lea.hbm %s1141_s16, 64  ;;  %s807_s29 = scalar_lea.hbm %s1197_s6, 128 }
 0x2eb   : > { %p804_p7 = scmp.ne.s32.totalorder %s1141_s16, %s803_s3  ;;  %p808_p13 = scmp.lt.u32.totalorder %s1141_s16, %s1197_s6 }
 0x2ec   : > { %p809_p6 = scmp.lt.u32.totalorder %s807_s29, %s803_s3  ;;  %p811_p12 = scmp.lt.u32.totalorder %s803_s3, %s1141_s16 }
 0x2ed   : > { %p805_p3 = pnand %p804_p7, %p1021_p10 }
 0x2ee   : > { %p810_p8 = por %p809_p6, %p808_p13 }
 0x2ef   : > { %p806_p4 = pneg %p805_p3 }
 0x2f0   : > { %p812_p11 = por %p811_p12, %p810_p8 }
 0x2f2   : > { %p813_p0 = pnand %p812_p11, %p806_p4 }
 0x2f4   : > { %816 = shalt.err (!%p813_p0)
}
 0x2f5   : > { %623 = dma.vmem_to_hbm [thread:$0]  (%p1021_p10), %s1143_s14, 64, %s1141_s16, %s428_s27  }
 0x2f6 PF: > { %s468_s7 = sand.u32 1, %s859_s21   ;;  %p1217_p5 = scmp.ne.s32.totalorder %s1206_s8, 0 }
 0x2f7   : > { %p1218_p9 = scmp.ge.s32.totalorder %s879_s26, 2  ;;  %s469_s12 = scalar_lea.sflag [#allocation4], %s468_s7 }
 0x2f9   : > { %p635_p1 = pnand %p1218_p9, %p1217_p5 }
 0x2fb   : > { %850 = dma.done.wait (!%p635_p1), %s469_s12, 64  }
 0x2fc   : > { %852 = vsyncadd (!%p635_p1), %s469_s12, 4294967232  ;;  %s478_s30 = scalar_lea.sflag [#allocation9], %s468_s7 }
 0x2fd   : > { %854 = dma.done.wait (!%p635_p1), %s478_s30, 64  }
 0x2fe   : > { %856 = vsyncadd (!%p635_p1), %s478_s30, 4294967232  ;;  %s27_s26 = sadd.s32 1, %s879_s26   ;;  %s1219_s21 = smov %s863_s22 }
 0x2ff   : > { %p24_p2 = scmp.ge.s32.totalorder %s27_s26, 4   ;;  %s1220_s22 = smov %s867_s23 }
 0x300   : > { %s1221_s23 = smov %s1030_s20  ;;  %s1222_s24 = smov %s875_s25 }
 0x301   : > { %s1223_s25 = smov %s1225_s13  ;;  %26 = sbr.rel (!%p24_p2) target bundleno = 11 (0xb), region = 106 }
 0x308   :  { %483 = vsyncpa [#allocation3], 1 }
 0x309   :  { %485 = vsyncpa [#allocation3 + $0x1], 1 }
 0x30a   :  { %486 = vsyncpa [#allocation6], 1 }
 0x30b   :  { %487 = vsyncpa [#allocation4], 1 }
 0x30c   :  { %489 = vsyncpa [#allocation4 + $0x1], 1 }
 0x30d   :  { %490 = vsyncpa [#allocation9], 1 }
 0x30e   :  { %492 = vsyncpa [#allocation9 + $0x1], 1 }

</bundles_post_ra>
